<compile_context>
chip_gen: v6e
topology: v6e:2x2x1
jax: 0.10.0
libtpu: 0.0.40
codegen_flags: <defaults>
</compile_context>

<pallas_src>
import jax
import jax.numpy as jnp
from jax.experimental import pallas as pl
from jax.experimental.pallas import tpu as pltpu


def _embedding_kernel(x_ref, pos_rest_ref, pos_cls_ref, out_ref):
    """Writes one (tb, N+1, dd) block of the final output.

    x_ref:        (tb, N,   dd)  patch embeddings for this batch block
    pos_rest_ref: (1,  N,   dd)  pos_embedding rows 1..N (shared across batch)
    pos_cls_ref:  (1,  1,   dd)  cls_token + pos_embedding row 0 (batch-invariant)
    out_ref:      (tb, N+1, dd)
    """
    # Rows 1..N: the bulk streaming add. The sublane-offset store stays in
    # VMEM; the HBM writeback is the whole aligned output block.
    out_ref[:, 1:, :] = x_ref[...] + pos_rest_ref[...]
    # Row 0: batch-invariant cls row, one tiny broadcast store per block.
    out_ref[:, 0:1, :] = jnp.broadcast_to(
        pos_cls_ref[...], (out_ref.shape[0], 1, out_ref.shape[2])
    )


def _device_kind():
    try:
        return jax.devices()[0].device_kind.lower()
    except Exception:
        return ""


def _target_block_bytes(kind):
    """Per-block byte budget.

    Working set is ~4.2x this (double-buffered x block + out block plus tiny
    bias blocks), so it must stay under the default scoped VMEM budget:
    v5e 16 MiB, v6e 32 MiB, v7x 32 MiB (64 MiB physical per TC).
    """
    if "v6" in kind:
        return 6 * 1024 * 1024          # ~25 MiB working set < 32 MiB scoped
    if "v7" in kind:
        return 4 * 1024 * 1024          # leave headroom: 64 MiB physical, 2 TCs
    return 5 * 1024 * 1024 // 2         # v5e / unknown: ~11 MiB < 16 MiB scoped


def _pick_blocks(B, N, D, itemsize, target_bytes):
    """Choose (batch rows per block, lanes per block)."""
    sub = max(8, 32 // itemsize)        # sublane multiple: 8 f32, 16 bf16, 32 int8
    rows = N + 1

    # Lane axis: split only when every block stays lane-dense (multiple of 128).
    # Real ViT widths satisfy this; tiny/odd D (e.g. the toy D=32) stays whole.
    dd = D
    if D % 128 == 0 and D > 128:
        dd = (target_bytes // (sub * rows * itemsize)) // 128 * 128
        dd = int(min(D, max(128, dd)))

    # Batch axis: biggest sublane-multiple row count under the budget.
    col_bytes = rows * dd * itemsize
    tb = (target_bytes // col_bytes) // sub * sub
    tb = int(max(sub, tb))
    if tb >= B:
        tb = B

    # Ensure >= 2 batch blocks when there is real work, so the "parallel" grid
    # axes can shard across v7x's two TensorCores (negligible cost elsewhere).
    total_bytes = B * rows * D * itemsize
    if tb == B and dd == D and B >= 2 * sub and total_bytes >= (4 << 20):
        half = -(-B // 2)
        tb = int(min(B, (half + sub - 1) // sub * sub))

    return tb, dd


def embedding_forward(x, cls_token, pos_embedding):
    """x: (B, N, D); cls_token: (1, 1, D); pos_embedding: (1, N+1, D).

    Returns concat([cls, x], axis=1) + pos_embedding with shape (B, N+1, D),
    written directly by the kernel (no wrapper-side concatenate).
    """
    B, N, D = x.shape
    dtype = x.dtype

    # Fold the cls token into row 0 of the positional table. Touches only the
    # tiny (N+1, D) parameter:
    #   out[:, 0 , :] = cls + pos[0]   (batch-invariant)
    #   out[:, 1:, :] = x   + pos[1:]
    pos_cls = (pos_embedding[:, 0:1, :] + cls_token).astype(dtype)   # (1, 1, D)
    pos_rest = pos_embedding[:, 1:, :].astype(dtype)                 # (1, N, D)

    tb, dd = _pick_blocks(
        B, N, D, jnp.dtype(dtype).itemsize, _target_block_bytes(_device_kind())
    )

    # Lane axis outer, batch axis inner: the bias blocks' index depends only on
    # the lane block, so they are DMA'd once per lane block and reused across
    # all inner batch steps.
    grid = (pl.cdiv(D, dd), pl.cdiv(B, tb))

    out = pl.pallas_call(
        _embedding_kernel,
        out_shape=jax.ShapeDtypeStruct((B, N + 1, D), dtype),
        grid_spec=pltpu.PrefetchScalarGridSpec(
            num_scalar_prefetch=0,
            grid=grid,
            in_specs=[
                pl.BlockSpec((tb, N, dd), lambda d, b: (b, 0, d)),
                pl.BlockSpec((1, N, dd), lambda d, b: (0, 0, d)),
                pl.BlockSpec((1, 1, dd), lambda d, b: (0, 0, d)),
            ],
            out_specs=pl.BlockSpec((tb, N + 1, dd), lambda d, b: (b, 0, d)),
        ),
        compiler_params=pltpu.CompilerParams(
            dimension_semantics=("parallel", "parallel"),
        ),
    )(x, pos_rest, pos_cls)

    # TODO(synk): in a full ViT this whole op should be the epilogue of the
    # patch-embedding matmul (accumulator finalize writes x_tile + pos_tile,
    # cls row emitted with the first output block) instead of a standalone
    # HBM round-trip of the activation tensor.
    return out


if __name__ == "__main__":
    # Small shapes consistent with the module: dim=32, n_patches=8, batch=2.
    B, N, D = 2, 8, 32
    key = jax.random.PRNGKey(0)
    k_x, k_cls, k_pos = jax.random.split(key, 3)

    x = jax.random.normal(k_x, (B, N, D), dtype=jnp.float32)
    cls_token = jax.random.normal(k_cls, (1, 1, D), dtype=jnp.float32)
    pos_embedding = jax.random.normal(k_pos, (1, N + 1, D), dtype=jnp.float32)

    out = embedding_forward(x, cls_token, pos_embedding)
    out = jax.block_until_ready(out)

    # Reference (same semantics as the PyTorch forward).
    ref = jnp.concatenate(
        [jnp.broadcast_to(cls_token, (B, 1, D)), x], axis=1
    ) + pos_embedding
    assert out.shape == (B, N + 1, D)
    assert jnp.allclose(out, ref, atol=1e-6), "mismatch vs reference"

    print("KERNEL_OK")
</pallas_src>

<mosaic_0001>
module attributes {stable_mosaic.version = 11 : i64} {
  func.func @_embedding_kernel(%arg0: i32, %arg1: i32, %arg2: memref<2x8x32xf32, #tpu.memory_space<vmem>>, %arg3: memref<1x8x32xf32, #tpu.memory_space<vmem>>, %arg4: memref<1x1x32xf32, #tpu.memory_space<vmem>>, %arg5: memref<2x9x32xf32, #tpu.memory_space<vmem>>) attributes {dimension_semantics = [#tpu.dimension_semantics<parallel>, #tpu.dimension_semantics<parallel>], iteration_bounds = array<i64: 1, 1>, scalar_prefetch = 0 : i64, scratch_operands = 0 : i64, tpu.core_type = #tpu.core_type<tc>, window_params = [{transform_indices = @transform_0, window_bounds = array<i64: 2, 8, 32>}, {transform_indices = @transform_1, window_bounds = array<i64: 1, 8, 32>}, {transform_indices = @transform_2, window_bounds = array<i64: 1, 1, 32>}, {transform_indices = @transform_3, window_bounds = array<i64: 2, 9, 32>}]} {
    %c0 = arith.constant 0 : index
    %c0_0 = arith.constant 0 : index
    %c0_1 = arith.constant 0 : index
    %0 = vector.load %arg2[%c0, %c0_0, %c0_1] : memref<2x8x32xf32, #tpu.memory_space<vmem>>, vector<2x8x32xf32>
    %c0_2 = arith.constant 0 : index
    %c0_3 = arith.constant 0 : index
    %c0_4 = arith.constant 0 : index
    %1 = vector.load %arg3[%c0_2, %c0_3, %c0_4] : memref<1x8x32xf32, #tpu.memory_space<vmem>>, vector<1x8x32xf32>
    %2 = vector.broadcast %1 : vector<1x8x32xf32> to vector<2x8x32xf32>
    %3 = arith.addf %0, %2 : vector<2x8x32xf32>
    %c0_5 = arith.constant 0 : index
    %c1 = arith.constant 1 : index
    %c0_6 = arith.constant 0 : index
    %4 = vector.load %arg5[%c0_5, %c1, %c0_6] : memref<2x9x32xf32, #tpu.memory_space<vmem>>, vector<2x8x32xf32>
    tpu.vector_store %arg5[%c0_5, %c1, %c0_6], %3 {strides = array<i32>} : memref<2x9x32xf32, #tpu.memory_space<vmem>>, vector<2x8x32xf32>,
    %c0_7 = arith.constant 0 : index
    %c0_8 = arith.constant 0 : index
    %c0_9 = arith.constant 0 : index
    %5 = vector.load %arg4[%c0_7, %c0_8, %c0_9] : memref<1x1x32xf32, #tpu.memory_space<vmem>>, vector<1x1x32xf32>
    %6 = vector.shape_cast %5 : vector<1x1x32xf32> to vector<1x1x32xf32>
    %7 = vector.broadcast %6 : vector<1x1x32xf32> to vector<2x1x32xf32>
    %c0_10 = arith.constant 0 : index
    %c0_11 = arith.constant 0 : index
    %c0_12 = arith.constant 0 : index
    %8 = vector.load %arg5[%c0_10, %c0_11, %c0_12] : memref<2x9x32xf32, #tpu.memory_space<vmem>>, vector<2x1x32xf32>
    tpu.vector_store %arg5[%c0_10, %c0_11, %c0_12], %7 {strides = array<i32>} : memref<2x9x32xf32, #tpu.memory_space<vmem>>, vector<2x1x32xf32>,
    return
  }
  func.func @transform_0(%arg0: i32, %arg1: i32) -> (i32, i32, i32) {
    %c0_i32 = arith.constant 0 : i32
    %c0_i32_0 = arith.constant 0 : i32
    return %arg1, %c0_i32, %arg0 : i32, i32, i32
  }
  func.func @transform_1(%arg0: i32, %arg1: i32) -> (i32, i32, i32) {
    %c0_i32 = arith.constant 0 : i32
    %c0_i32_0 = arith.constant 0 : i32
    %c0_i32_1 = arith.constant 0 : i32
    return %c0_i32, %c0_i32_0, %arg0 : i32, i32, i32
  }
  func.func @transform_2(%arg0: i32, %arg1: i32) -> (i32, i32, i32) {
    %c0_i32 = arith.constant 0 : i32
    %c0_i32_0 = arith.constant 0 : i32
    %c0_i32_1 = arith.constant 0 : i32
    return %c0_i32, %c0_i32_0, %arg0 : i32, i32, i32
  }
  func.func @transform_3(%arg0: i32, %arg1: i32) -> (i32, i32, i32) {
    %c0_i32 = arith.constant 0 : i32
    %c0_i32_0 = arith.constant 0 : i32
    return %arg1, %c0_i32, %arg0 : i32, i32, i32
  }
}

</mosaic_0001>

<bundles_post_ra>
// kernel: tpu_custom_call.1
= control target key start
LH: loop header
LB: loop body
LE: loop exit
PB: predicated region body
PF: predicated region fallthrough
CT: control target
= control target key end

     0   :  { %8 = vsyncpa [#allocation3], 0  ;;  %s151_s0 = inlined_call_operand.hbm [shape: f32[2,8,32], index: 0, kind: input, shape index: {}]   ;;  %s152_s1 = inlined_call_operand.hbm [shape: f32[1,8,32], index: 1, kind: input, shape index: {}]   ;;  %s153_s2 = inlined_call_operand.vmem [shape: f32[1,1,32], index: 2, kind: input, shape index: {}]   ;;  %s154_s3 = inlined_call_operand.vmem [shape: f32[2,9,32], index: 3, kind: output, shape index: {}]  }
   0x1   :  { %9 = vsyncpa [#allocation5], 0  ;;  %s106_s12 = smov [#allocation2]  }
   0x2   :  { %s15_s13 = sshll.u32 %s106_s12, 4  ;;  %s16_s13 = int_to_ptr.vmem [resolvable:$true] %s15_s13 }
   0x3   :  { %s70_s14 = scalar_lea.vmem %s16_s13, 256  ;;  %p75_p1 = scmp.lt.s32.totalorder %s16_s13, %s16_s13 }
   0x4   :  { %p71_p0 = scmp.ne.s32.totalorder %s16_s13, %s70_s14  ;;  %p76_p2 = scmp.lt.s32.totalorder %s70_s14, %s70_s14 }
   0x6   :  { %p77_p3 = por %p76_p2, %p75_p1 }
   0x8   :  { %p78_p4 = pnand %p77_p3, %p71_p0 }
   0xa   :  { %81 = shalt.err (!%p78_p4)
}
   0xb   :  { %s107_s15 = smov 128   ;;  %s108_s16 = smov 8  }
   0xc   :  { %21 = dma.hbm_to_vmem [thread:$0]  %s151_s0, 256, %s16_s13, [#allocation3], %s107_s15, %s107_s15, %s108_s16  }
   0xd   :  { %s109_s19 = smov [#allocation4]  }
   0xe   :  { %s28_s20 = sshll.u32 %s109_s19, 4  ;;  %s29_s20 = int_to_ptr.vmem [resolvable:$true] %s28_s20 }
   0xf   :  { %s90_s21 = scalar_lea.vmem %s29_s20, 128  ;;  %p95_p6 = scmp.lt.s32.totalorder %s29_s20, %s29_s20 }
  0x10   :  { %p91_p5 = scmp.ne.s32.totalorder %s29_s20, %s90_s21  ;;  %p96_p7 = scmp.lt.s32.totalorder %s90_s21, %s90_s21 }
  0x12   :  { %p97_p8 = por %p96_p7, %p95_p6 }
  0x14   :  { %p98_p9 = pnand %p97_p8, %p91_p5 }
  0x16   :  { %101 = shalt.err (!%p98_p9)
}
  0x17   :  { %31 = dma.hbm_to_vmem [thread:$0]  %s152_s1, 128, %s29_s20, [#allocation5]  }
  0x18   :  { %102 = dma.done.wait [#allocation3], 256  }
  0x19   :  { %103 = vsyncadd [#allocation3], 4294967040 }
  0x1a   :  { %104 = dma.done.wait [#allocation5], 128  }
  0x1b   :  { %105 = vsyncadd [#allocation5], 4294967168  ;;  %vm49_vm0 = vcmask 253952   ;;  %v40_v0 = vld [vmem:[#allocation2] sm:$0xff]  ;;  %v42_v1 = vld [vmem:[#allocation4] sm:$0xff]  ;;  %vm45_vm1 = vcmask 261120  }
  0x1c   :  { %v41_v2 = vld [vmem:[#allocation2 + $0x8] sm:$0xff]  ;;  %v43_v3 = vadd.f32 %v42_v1, %v40_v0  ;;  %v48_v5 = vld [vmem:[%s153_s2] sm:$0x1] }
  0x1d   :  { %v44_v4 = vadd.f32 %v42_v1, %v41_v2  ;;  %50 = vst.msk [vmem:[%s154_s3] sm:$0x1] %vm49_vm0, %v48_v5  ;;  %51 = vst.msk [vmem:[%s154_s3 + $0x10] sm:$0x1] %vm49_vm0, %v48_v5 }
  0x1e   :  { %46 = vst.msk [vmem:[%s154_s3 + $0x1] sm:$0xff] %vm45_vm1, %v43_v3 }
  0x1f   :  { %47 = vst.msk [vmem:[%s154_s3 + $0x11] sm:$0xff] %vm45_vm1, %v44_v4 }
  0x20   :  { %56 = vsyncpa [#allocation3], 1 }
  0x21   :  { %57 = vsyncpa [#allocation5], 1 }

</bundles_post_ra>
